<compile_context>
chip_gen: v7x
topology: tpu7x:2x2x1
jax: 0.10.0
libtpu: 0.0.40
codegen_flags: <defaults>
</compile_context>

<pallas_src>
import math

import jax
import jax.numpy as jnp
from jax.experimental import pallas as pl
from jax.experimental.pallas import tpu as pltpu

_MIB = 1024 * 1024


def _mf_kernel(u_ref, it_ref, o_ref):
    # u_ref: (tm, D) user tile; it_ref: (D, tn) pre-transposed item tile;
    # o_ref: (tm, tn). Plain contraction -> MXU, f32 accumulation.
    o_ref[...] = jnp.dot(
        u_ref[...], it_ref[...], preferred_element_type=jnp.float32
    ).astype(o_ref.dtype)


def _round_up(x, m):
    return ((x + m - 1) // m) * m


def _auto_tiles(M, N, D, in_itemsize, out_itemsize, tile_budget_bytes):
    """Largest lane-dense (tm, tn) whose double-buffered footprint fits budget."""
    d_lane = max(_round_up(D, 128), 128)   # user tile (tm, D): D lane-padded
    d_sub = max(_round_up(D, 8), 8)        # item tile (D, tn): D sublane-padded

    def footprint(tm, tn):
        u = tm * d_lane * in_itemsize
        it = d_sub * tn * in_itemsize
        o = tm * tn * out_itemsize
        return 2 * (u + it + o)            # double-buffered pipeline

    tm_opts = [t for t in (1024, 512, 256, 128, 64, 32, 16, 8) if t < M]
    if M <= 1024:
        tm_opts = [M] + tm_opts
    tn_opts = [t for t in (4096, 2048, 1024, 512, 256, 128) if t < N]
    if N <= 4096:
        tn_opts = [N] + tn_opts

    best = None
    for tm in tm_opts:
        for tn in tn_opts:
            if footprint(tm, tn) > tile_budget_bytes:
                continue
            key = (tm * tn, tn)            # max area, tie-break on wider tn
            if best is None or key > best[0]:
                best = (key, (tm, tn))
    if best is None:
        return tm_opts[-1], tn_opts[-1]
    return best[1]


def mf_forward(user_emb, item_emb, *, tm=None, tn=None, compute_dtype=None,
               out_dtype=jnp.float32, vmem_limit_bytes=None):
    """Computes user_emb @ item_emb.T with a Pallas TPU kernel.

    compute_dtype: MXU operand dtype. Defaults to the input dtype (no extra
        wrapper-side cast pass). Pass jnp.bfloat16 to halve input HBM traffic.
    out_dtype: output dtype. f32 matches the PyTorch module bit-for-bit intent;
        bf16 is the recommended fast path — it halves the dominant
        output-writeback traffic and the VMEM tile footprint.
    """
    M, D = user_emb.shape
    N, D2 = item_emb.shape
    if D != D2:
        raise ValueError("embedding dims must match")

    if compute_dtype is None:
        compute_dtype = user_emb.dtype
    in_itemsize = jnp.dtype(compute_dtype).itemsize
    out_itemsize = jnp.dtype(out_dtype).itemsize

    # Cast only if needed, then pre-transpose items to (D, N). The one-time
    # transpose costs N*D bytes — negligible vs M*N output traffic.
    u = user_emb if user_emb.dtype == compute_dtype else user_emb.astype(compute_dtype)
    it = item_emb if item_emb.dtype == compute_dtype else item_emb.astype(compute_dtype)
    it_t = it.T  # (D, N)

    # Generation-aware VMEM budget (v5e/v6e: 128 MiB, v7x: 64 MiB per core).
    try:
        vmem_cap = int(pltpu.get_tpu_info().vmem_capacity_bytes)
    except Exception:
        vmem_cap = 64 * _MIB  # conservative fallback (v7x-sized)
    if vmem_limit_bytes is None:
        # v5e/v6e -> 64 MiB, v7x -> 48 MiB.
        vmem_limit_bytes = min(64 * _MIB, max(vmem_cap - 16 * _MIB, 32 * _MIB))
    tile_budget = max(int(vmem_limit_bytes) - 8 * _MIB, 16 * _MIB)

    auto = tm is None and tn is None
    auto_tm, auto_tn = _auto_tiles(M, N, D, in_itemsize, out_itemsize, tile_budget)
    if tm is None:
        tm = auto_tm
    else:
        tm = min(int(tm), M)
        if tm != M and tm % 8 != 0:
            raise ValueError(f"tm={tm} must be a multiple of 8 or the full extent {M}")
    if tn is None:
        tn = auto_tn
    else:
        tn = min(int(tn), N)
        if tn != N and tn % 128 != 0:
            raise ValueError(f"tn={tn} must be a multiple of 128 or the full extent {N}")

    # v7x megacore: if everything fit in a single block but the output is big,
    # split one "parallel" axis so both TensorCores get work.
    if (auto and pl.cdiv(M, tm) == 1 and pl.cdiv(N, tn) == 1
            and M * N * out_itemsize >= 4 * _MIB):
        if tn % 256 == 0:
            tn //= 2
        elif tm % 16 == 0:
            tm //= 2

    grid = (pl.cdiv(M, tm), pl.cdiv(N, tn))
    u_spec = pl.BlockSpec((tm, D), lambda i, j: (i, 0))
    i_spec = pl.BlockSpec((D, tn), lambda i, j: (0, j))
    o_spec = pl.BlockSpec((tm, tn), lambda i, j: (i, j))

    cost = pl.CostEstimate(
        flops=2 * M * N * D,
        transcendentals=0,
        bytes_accessed=(M * D * in_itemsize
                        + grid[0] * N * D * in_itemsize  # item tiles re-streamed per i
                        + M * N * out_itemsize),
    )

    return pl.pallas_call(
        _mf_kernel,
        out_shape=jax.ShapeDtypeStruct((M, N), out_dtype),
        grid_spec=pltpu.PrefetchScalarGridSpec(
            num_scalar_prefetch=0,
            grid=grid,
            in_specs=[u_spec, i_spec],
            out_specs=o_spec,
        ),
        compiler_params=pltpu.CompilerParams(
            dimension_semantics=("parallel", "parallel"),
            vmem_limit_bytes=int(vmem_limit_bytes),
        ),
        cost_estimate=cost,
    )(u, it_t)


def xavier_uniform(key, shape, dtype=jnp.float32):
    # Matches torch.nn.init.xavier_uniform_ for a 2-D weight:
    # fan_in = shape[1], fan_out = shape[0].
    fan_out, fan_in = shape
    bound = math.sqrt(6.0 / (fan_in + fan_out))
    return jax.random.uniform(key, shape, dtype=dtype, minval=-bound, maxval=bound)


if __name__ == "__main__":
    key = jax.random.PRNGKey(0)
    k_user, k_item = jax.random.split(key)

    # Shapes consistent with the module's __init__ (small demo sizes).
    num_users, num_items, embedding_dim = 64, 128, 32
    user_emb = xavier_uniform(k_user, (num_users, embedding_dim))
    item_emb = xavier_uniform(k_item, (num_items, embedding_dim))

    # Case 1: module-faithful path (f32 operands, f32 output), auto tiles.
    pred = jax.block_until_ready(mf_forward(user_emb, item_emb))
    ref = user_emb @ item_emb.T
    assert pred.shape == (num_users, num_items)
    assert pred.dtype == jnp.float32
    assert jnp.allclose(pred, ref, atol=1e-2, rtol=1e-2)

    # Case 2: recommended performance path (bf16 operands + bf16 output).
    M2, N2 = 256, 512
    u2 = xavier_uniform(k_user, (M2, embedding_dim))
    i2 = xavier_uniform(k_item, (N2, embedding_dim))
    pred2 = jax.block_until_ready(
        mf_forward(u2, i2, compute_dtype=jnp.bfloat16, out_dtype=jnp.bfloat16))
    ref2 = (u2.astype(jnp.bfloat16).astype(jnp.float32)
            @ i2.astype(jnp.bfloat16).astype(jnp.float32).T)
    assert pred2.dtype == jnp.bfloat16
    assert jnp.allclose(pred2.astype(jnp.float32), ref2, atol=1e-2, rtol=2e-2)

    # Case 3: explicit multi-block grid (tm=128, tn=128), f32 tiled-item path.
    pred3 = jax.block_until_ready(mf_forward(u2, i2, tm=128, tn=128))
    ref3 = u2 @ i2.T
    assert jnp.allclose(pred3, ref3, atol=1e-2, rtol=1e-2)

    print("KERNEL_OK")
</pallas_src>

<mosaic_0001>
module attributes {stable_mosaic.version = 11 : i64} {
  func.func @_mf_kernel(%arg0: i32, %arg1: i32, %arg2: memref<64x32xf32, #tpu.memory_space<vmem>>, %arg3: memref<32x128xf32, #tpu.memory_space<vmem>>, %arg4: memref<64x128xf32, #tpu.memory_space<vmem>>) attributes {dimension_semantics = [#tpu.dimension_semantics<parallel>, #tpu.dimension_semantics<parallel>], iteration_bounds = array<i64: 1, 1>, scalar_prefetch = 0 : i64, scratch_operands = 0 : i64, tpu.core_type = #tpu.core_type<tc>, window_params = [{transform_indices = @transform_0, window_bounds = array<i64: 64, 32>}, {transform_indices = @transform_1, window_bounds = array<i64: 32, 128>}, {transform_indices = @transform_2, window_bounds = array<i64: 64, 128>}]} {
    %c0 = arith.constant 0 : index
    %c0_0 = arith.constant 0 : index
    %0 = vector.load %arg2[%c0, %c0_0] : memref<64x32xf32, #tpu.memory_space<vmem>>, vector<64x32xf32>
    %c0_1 = arith.constant 0 : index
    %c0_2 = arith.constant 0 : index
    %1 = vector.load %arg3[%c0_1, %c0_2] : memref<32x128xf32, #tpu.memory_space<vmem>>, vector<32x128xf32>
    %cst = arith.constant dense<0.000000e+00> : vector<64x128xf32>
    %2 = tpu.matmul %0, %1, %cst {dimension_numbers = #tpu.dot_dimension_numbers<[1], [0], [0], [1], [0, 0, 1, 1], [], []>} : vector<64x32xf32>, vector<32x128xf32>, vector<64x128xf32> -> vector<64x128xf32>
    %c0_3 = arith.constant 0 : index
    %c0_4 = arith.constant 0 : index
    %3 = vector.load %arg4[%c0_3, %c0_4] : memref<64x128xf32, #tpu.memory_space<vmem>>, vector<64x128xf32>
    tpu.vector_store %arg4[%c0_3, %c0_4], %2 {strides = array<i32>} : memref<64x128xf32, #tpu.memory_space<vmem>>, vector<64x128xf32>,
    return
  }
  func.func @transform_0(%arg0: i32, %arg1: i32) -> (i32, i32) {
    %c0_i32 = arith.constant 0 : i32
    %c0_i32_0 = arith.constant 0 : i32
    return %arg0, %c0_i32 : i32, i32
  }
  func.func @transform_1(%arg0: i32, %arg1: i32) -> (i32, i32) {
    %c0_i32 = arith.constant 0 : i32
    %c0_i32_0 = arith.constant 0 : i32
    return %c0_i32, %arg1 : i32, i32
  }
  func.func @transform_2(%arg0: i32, %arg1: i32) -> (i32, i32) {
    %c0_i32 = arith.constant 0 : i32
    return %arg0, %arg1 : i32, i32
  }
}

</mosaic_0001>

<bundles_post_ra>
// kernel: tpu_custom_call.1
= control target key start
LH: loop header
LB: loop body
LE: loop exit
PB: predicated region body
PF: predicated region fallthrough
CT: control target
= control target key end

     0   :  { %vm24_vm0 = vcmask 261120   ;;  %s331_s0 = inlined_call_operand.vmem [shape: f32[64,32], index: 0, kind: input, shape index: {}]   ;;  %s332_s1 = inlined_call_operand.vmem [shape: f32[32,128], index: 1, kind: input, shape index: {}]   ;;  %s333_s2 = inlined_call_operand.hbm [shape: f32[64,128], index: 2, kind: output, shape index: {}]  }
   0x1   :  { %v20_v0 = vld [vmem:[%s332_s1] sm:$0xff]  ;;  %v21_v1 = vld [vmem:[%s332_s1 + $0x8] sm:$0xff]  ;;  %v22_v2 = vld [vmem:[%s332_s1 + $0x10] sm:$0xff] }
   0x2   :  { %v218_v3 = vpack.c.bf16 %v21_v1, %v20_v0  ;;  %v23_v4 = vld [vmem:[%s332_s1 + $0x18] sm:$0xff]  ;;  %v12_v5 = vld [vmem:[%s331_s0] sm:$0xff] }
   0x3   :  { %v16_v6 = vld [vmem:[%s331_s0 + $0x20] sm:$0xff]  ;;  %v222_v7 = vpack.c.bf16 %v23_v4, %v22_v2  ;;  %206 = vmatprep.mubr.msk.f32.mxu0 %vm24_vm0, %v12_v5 }
   0x4   :  { %212 = vmatprep.mubr.msk.f32.mxu1 %vm24_vm0, %v16_v6  ;;  %219 = vmatprep.subr.bf16.mxu0 %v218_v3 }
   0x5   :  { %226 = vmatprep.subr.bf16.mxu1 %v218_v3  ;;  %221 = vmatpush3.bf16.msra.mxu0 %v218_v3 }
   0x6   :  { %228 = vmatpush3.bf16.msra.mxu1 %v218_v3 }
   0x7   :  { %7 = vsyncpa [#allocation3], 0  ;;  %223 = vmatprep.subr.bf16.mxu0 %v222_v7  ;;  %227 = vmatprep.subr.bf16.mxu1 %v222_v7  ;;  %v13_v8 = vld [vmem:[%s331_s0 + $0x8] sm:$0xff]  ;;  %v14_v10 = vld [vmem:[%s331_s0 + $0x10] sm:$0xff]  ;;  %s257_s4 = smov [#allocation2]  }
   0x8   :  { %v17_v9 = vld [vmem:[%s331_s0 + $0x28] sm:$0xff]  ;;  %v18_v11 = vld [vmem:[%s331_s0 + $0x30] sm:$0xff]  ;;  %v15_v12 = vld [vmem:[%s331_s0 + $0x18] sm:$0xff]  ;;  %s167_s5 = sshll.u32 %s257_s4, 4  ;;  %s168_s5 = int_to_ptr.vmem [resolvable:$true] %s167_s5 }
   0x9   :  { %225 = vmatpush3.bf16.msra.mxu0 %v222_v7  ;;  %v19_v13 = vld [vmem:[%s331_s0 + $0x38] sm:$0xff]  ;;  %s233_s0 = scalar_lea.vmem %s168_s5, 1024  ;;  %p238_p1 = scmp.lt.s32.totalorder %s168_s5, %s168_s5 }
   0xa   :  { %229 = vmatpush3.bf16.msra.mxu1 %v222_v7  ;;  %p234_p0 = scmp.ne.s32.totalorder %s168_s5, %s233_s0  ;;  %p239_p2 = scmp.lt.s32.totalorder %s233_s0, %s233_s0 }
   0xc   :  { %207 = vmatmul.mubr.msk.f32.vlgmr.msra.gmra.mrb[0].mxu0 %vm24_vm0, %v13_v8  ;;  %p240_p3 = por %p239_p2, %p238_p1 }
   0xd   :  { %213 = vmatmul.mubr.msk.f32.vlgmr.msra.gmra.mrb[0].mxu1 %vm24_vm0, %v17_v9  ;;  %209 = vmatprep.mubr.msk.f32.mxu0 %vm24_vm0, %v14_v10 }
   0xe   :  { %215 = vmatprep.mubr.msk.f32.mxu1 %vm24_vm0, %v18_v11  ;;  %p241_p4 = pnand %p240_p3, %p234_p0 }
  0x10   :  { %210 = vmatmul.mubr.msk.f32.gmra.mrb[2].mxu0 %vm24_vm0, %v15_v12 }
  0x11   :  { %216 = vmatmul.mubr.msk.f32.gmra.mrb[2].mxu1 %vm24_vm0, %v19_v13 }
  0xdf   :  { %v208_v14 = vpop.f32.mrb[0].mxu0 }
  0xe0   :  { %v214_v15 = vpop.f32.mrb[0].mxu1  ;;  %155 = vst [vmem:[#allocation2 + $0x8] sm:$0xff] %v208_v14  ;;  %v115_v16 = vpop.f32.mrb[1].mxu0 }
  0xe1   :  { %159 = vst [vmem:[#allocation2 + $0x28] sm:$0xff] %v214_v15  ;;  %v135_v17 = vpop.f32.mrb[1].mxu1  ;;  %154 = vst [vmem:[#allocation2] sm:$0xff] %v115_v16 }
  0xe2   :  { %158 = vst [vmem:[#allocation2 + $0x20] sm:$0xff] %v135_v17 }
  0xe3   :  { %v211_v18 = vpop.f32.mrb[2].mxu0 }
  0xe4   :  { %v217_v19 = vpop.f32.mrb[2].mxu1  ;;  %157 = vst [vmem:[#allocation2 + $0x18] sm:$0xff] %v211_v18  ;;  %v125_v20 = vpop.f32.mrb[3].mxu0 }
  0xe5   :  { %161 = vst [vmem:[#allocation2 + $0x38] sm:$0xff] %v217_v19  ;;  %v145_v21 = vpop.f32.mrb[3].mxu1  ;;  %156 = vst [vmem:[#allocation2 + $0x10] sm:$0xff] %v125_v20 }
  0xe6   :  { %160 = vst [vmem:[#allocation2 + $0x30] sm:$0xff] %v145_v21 }
  0xe7   :  { %244 = shalt.err (!%p241_p4)
}
  0xe8   :  { %s245_s8 = scalar_lea.hbm %s333_s2, 1024 }
  0xe9   :  { %p246_p5 = scmp.ne.s32.totalorder %s333_s2, %s245_s8  ;;  %p249_p6 = scmp.lt.u32.totalorder %s245_s8, %s333_s2 }
  0xeb   :  { %p251_p7 = pnand %p249_p6, %p246_p5 }
  0xed   :  { %254 = shalt.err (!%p251_p7)
}
  0xee   :  { %s258_s13 = smov 128   ;;  %s259_s14 = smov 8  }
  0xef   :  { %173 = dma.vmem_to_hbm [thread:$0]  %s168_s5, 1024, %s333_s2, [#allocation3], %s258_s13, %s258_s13, %s259_s14  }
  0xf0   :  { %255 = dma.done.wait [#allocation3], 1024  }
  0xf1   :  { %256 = vsyncadd [#allocation3], 4294966272 }
  0xf2   :  { %177 = vsyncpa [#allocation3], 1 }

</bundles_post_ra>
